<compile_context>
chip_gen: v6e
topology: v6e:2x2x1
jax: 0.10.0
libtpu: 0.0.40
codegen_flags: <defaults>
</compile_context>

<pallas_src>
import functools

import jax
import jax.numpy as jnp
from jax import lax
from jax.experimental import pallas as pl
from jax.experimental.pallas import tpu as pltpu


# (L, V) x (L, D) -> (V, D): contract the leading (L) dim of both operands.
_CONTRACT_L = (((0,), (0,)), ((), ()))


def _round_up(x, m):
    return (x + m - 1) // m * m


def _embed_rows(cols_lv, w_ld, bias_1d, out_dtype):
    """(L, V) columns of the inverted input -> (V, D) embedded rows.

    The weight arrives already in the compute dtype (pre-cast once in the
    wrapper); only the activation columns are cast here.  Accumulation and the
    bias add stay in f32 (preferred_element_type).
    """
    acc = lax.dot_general(
        cols_lv.astype(w_ld.dtype), w_ld,
        dimension_numbers=_CONTRACT_L,
        preferred_element_type=jnp.float32)
    return (acc + bias_1d).astype(out_dtype)


def _kernel_x_only(x_ref, w_ref, b_ref, o_ref):
    # x_ref: (1, L, TV)   w_ref: (L, TD)   b_ref: (1, TD)   o_ref: (1, TV, TD)
    # Used for x_mark=None (both paths).  Partial edge blocks are masked by
    # Pallas on writeback, so a single full store is always correct.
    o_ref[0] = _embed_rows(x_ref[0], w_ref[...], b_ref[...], o_ref.dtype)


def _kernel_fused(x_ref, xm_ref, w_ref, b_ref, o_ref, *, n_var):
    # Small-N slab path: x_ref (1, L, N), xm_ref (1, L, M), o_ref (1, N+M, TD).
    w = w_ref[...]
    b = b_ref[...]
    o_ref[0, 0:n_var] = _embed_rows(x_ref[0], w, b, o_ref.dtype)
    o_ref[0, n_var:] = _embed_rows(xm_ref[0], w, b, o_ref.dtype)


def _kernel_tiled(x_ref, xm_ref, w_ref, b_ref, o_ref, *, nt_x, rem_x, s1, s2):
    # Ragged tiled path, grid = (B, nt_x [+1 if the mark rows spill over]).
    #   j <  nt_x  : embed a TV-wide column tile of x.  Full (lane+sublane
    #                dense) store; the out-of-array tail of the last ragged
    #                tile is masked by Pallas on writeback.
    #   j == nt_x-1: additionally overwrite local rows [rem_x, rem_x+s1) with
    #                the first s1 time-mark rows (they live in this block).
    #   j == nt_x  : (only exists if s2 > 0) the remaining s2 mark rows at the
    #                start of one extra output block (partial, masked store —
    #                do not convert to a full-block store).
    j = pl.program_id(1)
    w = w_ref[...]
    b = b_ref[...]

    @pl.when(j < nt_x)
    def _():
        o_ref[0] = _embed_rows(x_ref[0], w, b, o_ref.dtype)

    if s1 > 0:
        @pl.when(j == nt_x - 1)
        def _():
            o_ref[0, rem_x:rem_x + s1] = _embed_rows(
                xm_ref[0, :, 0:s1], w, b, o_ref.dtype)

    if s2 > 0:
        @pl.when(j == nt_x)
        def _():
            o_ref[0, 0:s2] = _embed_rows(
                xm_ref[0, :, s1:s1 + s2], w, b, o_ref.dtype)


def data_embedding_inverted(x, x_mark, weight, bias, *,
                            compute_dtype=jnp.bfloat16,
                            out_dtype=None,
                            variate_tile=1024):
    """DataEmbedding_inverted forward (eval mode).

    x:      [B, L, N]
    x_mark: [B, L, M] or None
    weight: [L, D]   (transposed vs. torch Linear's [D, L])
    bias:   [D]
    returns [B, N(+M), D] in `out_dtype` (default: x.dtype)

    compute_dtype: MXU input dtype (bf16 default for speed; pass jnp.float32
    for bit-closer parity with PyTorch's f32 Linear).
    """
    B, L, N = x.shape
    M = 0 if x_mark is None else x_mark.shape[2]
    V = N + M
    assert weight.ndim == 2 and weight.shape[0] == L, (
        "weight must be [L, d_model] (transposed vs. torch Linear's "
        f"[d_model, L]); got {weight.shape} with L={L}")
    D = weight.shape[1]
    assert bias.shape == (D,), f"bias must be [{D}], got {bias.shape}"
    if out_dtype is None:
        out_dtype = x.dtype

    # Lane-dense output: pad d_model up to a multiple of 128 (masked partial
    # lane stores are the single biggest measured store-path penalty).
    D_pad = _round_up(D, 128)
    if D_pad != D:
        weight = jnp.pad(weight, ((0, 0), (0, D_pad - D)))
        bias = jnp.pad(bias, (0, D_pad - D))
    # Pre-cast the grid-invariant weight ONCE (no per-step VPU cast, half the
    # HBM/DMA/VMEM bytes).  Bias and accumulation stay f32.
    weight = weight.astype(compute_dtype)
    bias2d = bias.astype(jnp.float32).reshape(1, D_pad)

    x_isz = jnp.dtype(x.dtype).itemsize
    w_isz = jnp.dtype(compute_dtype).itemsize
    o_isz = jnp.dtype(out_dtype).itemsize

    cost = pl.CostEstimate(
        flops=2 * B * V * L * D_pad,
        transcendentals=0,
        bytes_accessed=(x_isz * B * L * V
                        + w_isz * L * D_pad
                        + o_isz * B * V * D_pad),
    )

    def _vmem_limit(block_bytes):
        # Double-buffered working set + margin.  Floor at the v6e/v7x scoped
        # default (covers v5e's 16 MiB default), cap at v7x physical VMEM.
        need = 2 * block_bytes + (4 << 20)
        return int(min(max(need, 32 << 20), 64 << 20))

    if N >= 128:
        # ------------- tiled path: grid = (B, variate tiles) ----------------
        tv = min(_round_up(N, 128), max(128, _round_up(variate_tile, 128)))
        nt_x = pl.cdiv(N, tv)                  # x column tiles (ragged last)
        rem_x = N - (nt_x - 1) * tv            # valid rows in the last x tile
        s1 = min(M, tv - rem_x)                # mark rows sharing the last block
        s2 = M - s1                            # mark rows spilling over
        assert M <= tv, "time-mark feature count must fit in one variate tile"
        nt = nt_x + (1 if s2 > 0 else 0)

        # On the spill-over mark step the x block is unused; clamp its index
        # so we never address past the last x tile.
        x_map = lambda b, j: (b, 0, jnp.minimum(j, nt_x - 1))
        in_specs = [pl.BlockSpec((1, L, tv), x_map)]
        operands = [x]
        if M:
            in_specs.append(pl.BlockSpec((1, L, M), lambda b, j: (b, 0, 0)))
            operands.append(x_mark)
        # weight / bias: grid-invariant (constant block index) -> their DMA is
        # hoisted out of the steady-state pipeline.
        in_specs += [
            pl.BlockSpec((L, D_pad), lambda b, j: (0, 0)),
            pl.BlockSpec((1, D_pad), lambda b, j: (0, 0)),
        ]
        operands += [weight, bias2d]

        if M:
            kernel = functools.partial(_kernel_tiled, nt_x=nt_x, rem_x=rem_x,
                                       s1=s1, s2=s2)
        else:
            kernel = _kernel_x_only

        block_bytes = (L * tv * x_isz + L * M * x_isz + L * D_pad * w_isz
                       + D_pad * 4 + tv * D_pad * o_isz)

        out = pl.pallas_call(
            kernel,
            out_shape=jax.ShapeDtypeStruct((B, V, D_pad), out_dtype),
            grid=(B, nt),
            in_specs=in_specs,
            out_specs=pl.BlockSpec((1, tv, D_pad), lambda b, j: (b, j, 0)),
            compiler_params=pltpu.CompilerParams(
                dimension_semantics=("parallel", "parallel"),
                vmem_limit_bytes=_vmem_limit(block_bytes)),
            cost_estimate=cost,
        )(*operands)
    else:
        # ------------- small-N slab path: one fused slab per batch ----------
        # When B == 1 a single grid step would idle one of v7x's two
        # TensorCores, so split d_model into two parallel blocks in that case.
        if B == 1 and D_pad >= 256:
            td = _round_up(pl.cdiv(D_pad, 2), 128)
        else:
            td = D_pad
        nd = pl.cdiv(D_pad, td)

        in_specs = [pl.BlockSpec((1, L, N), lambda b, dj: (b, 0, 0))]
        operands = [x]
        if M:
            in_specs.append(pl.BlockSpec((1, L, M), lambda b, dj: (b, 0, 0)))
            operands.append(x_mark)
        in_specs += [
            pl.BlockSpec((L, td), lambda b, dj: (0, dj)),
            pl.BlockSpec((1, td), lambda b, dj: (0, dj)),
        ]
        operands += [weight, bias2d]

        kernel = (functools.partial(_kernel_fused, n_var=N) if M
                  else _kernel_x_only)

        block_bytes = (L * N * x_isz + L * M * x_isz + L * td * w_isz
                       + td * 4 + V * td * o_isz)

        out = pl.pallas_call(
            kernel,
            out_shape=jax.ShapeDtypeStruct((B, V, D_pad), out_dtype),
            grid=(B, nd),
            in_specs=in_specs,
            out_specs=pl.BlockSpec((1, V, td), lambda b, dj: (b, 0, dj)),
            compiler_params=pltpu.CompilerParams(
                dimension_semantics=("parallel", "parallel"),
                vmem_limit_bytes=_vmem_limit(block_bytes)),
            cost_estimate=cost,
        )(*operands)

    if D_pad != D:
        out = out[..., :D]

    # TODO(synk): training-mode dropout (pltpu.prng_seed / prng_random_bits)
    # intentionally omitted; nn.Dropout is identity in eval mode.
    return out


if __name__ == "__main__":
    import numpy as np

    key = jax.random.PRNGKey(0)
    keys = jax.random.split(key, 12)

    def ref_embed(x, x_mark, weight, bias):
        xt = np.transpose(np.asarray(x, np.float64), (0, 2, 1))
        if x_mark is not None:
            xm = np.transpose(np.asarray(x_mark, np.float64), (0, 2, 1))
            xt = np.concatenate([xt, xm], axis=1)
        return (np.einsum("bvl,ld->bvd", xt, np.asarray(weight, np.float64))
                + np.asarray(bias, np.float64))

    def check(out, ref, atol, rtol):
        np.testing.assert_allclose(np.asarray(out, np.float64), ref,
                                   atol=atol, rtol=rtol)

    # --- 1. small shapes (slab path, B >= 2) ------------------------------
    B, L, N, M, D = 2, 8, 4, 3, 32
    x = jax.random.normal(keys[0], (B, L, N), dtype=jnp.float32)
    x_mark = jax.random.normal(keys[1], (B, L, M), dtype=jnp.float32)
    weight = jax.random.normal(keys[2], (L, D), dtype=jnp.float32) / jnp.sqrt(L)
    bias = jax.random.normal(keys[3], (D,), dtype=jnp.float32) * 0.01
    ref = ref_embed(x, x_mark, weight, bias)

    out32 = jax.block_until_ready(
        data_embedding_inverted(x, x_mark, weight, bias,
                                compute_dtype=jnp.float32))
    assert out32.shape == (B, N + M, D)
    check(out32, ref, 1e-3, 1e-3)

    out_bf = jax.block_until_ready(
        data_embedding_inverted(x, x_mark, weight, bias))   # bf16 compute
    check(out_bf, ref, 5e-2, 5e-2)

    out_bfo = jax.block_until_ready(
        data_embedding_inverted(x, x_mark, weight, bias,
                                out_dtype=jnp.bfloat16))    # bf16 output
    assert out_bfo.dtype == jnp.bfloat16
    check(out_bfo, ref, 1e-1, 1e-1)

    out_nm = jax.block_until_ready(
        data_embedding_inverted(x, None, weight, bias,
                                compute_dtype=jnp.float32))
    check(out_nm, ref_embed(x, None, weight, bias), 1e-3, 1e-3)

    # --- 2. slab path with B == 1 (d_model split across two blocks) --------
    B1, L1, N1, M1, D1 = 1, 8, 5, 2, 320
    x1 = jax.random.normal(keys[4], (B1, L1, N1), dtype=jnp.float32)
    xm1 = jax.random.normal(keys[5], (B1, L1, M1), dtype=jnp.float32)
    w1 = jax.random.normal(keys[6], (L1, D1), dtype=jnp.float32) / jnp.sqrt(L1)
    b1 = jax.random.normal(keys[7], (D1,), dtype=jnp.float32) * 0.01
    out1 = jax.block_until_ready(
        data_embedding_inverted(x1, xm1, w1, b1, compute_dtype=jnp.float32))
    assert out1.shape == (B1, N1 + M1, D1)
    check(out1, ref_embed(x1, xm1, w1, b1), 1e-3, 1e-3)

    # --- 3. ragged tiled path: N = 321 (mark rows in the last x block) -----
    B2, L2, N2, M2 = 2, 16, 321, 3
    x2 = jax.random.normal(keys[8], (B2, L2, N2), dtype=jnp.float32)
    xm2 = jax.random.normal(keys[9], (B2, L2, M2), dtype=jnp.float32)
    w2 = jax.random.normal(keys[2], (L2, D), dtype=jnp.float32) / jnp.sqrt(L2)
    out2 = jax.block_until_ready(
        data_embedding_inverted(x2, xm2, w2, bias, compute_dtype=jnp.float32))
    assert out2.shape == (B2, N2 + M2, D)
    check(out2, ref_embed(x2, xm2, w2, bias), 1e-3, 1e-3)

    # --- 4. ragged tiled path with spill-over mark rows (N = 383) ----------
    B3, L3, N3, M3 = 1, 16, 383, 3
    x3 = jax.random.normal(keys[10], (B3, L3, N3), dtype=jnp.float32)
    xm3 = jax.random.normal(keys[11], (B3, L3, M3), dtype=jnp.float32)
    out3 = jax.block_until_ready(
        data_embedding_inverted(x3, xm3, w2, bias, compute_dtype=jnp.float32))
    assert out3.shape == (B3, N3 + M3, D)
    check(out3, ref_embed(x3, xm3, w2, bias), 1e-3, 1e-3)

    # --- 5. multi-tile ragged path (N = 1400 > tile of 1024) + no marks ----
    B4, L4, N4, M4 = 1, 8, 1400, 2
    x4 = jax.random.normal(keys[0], (B4, L4, N4), dtype=jnp.float32)
    xm4 = jax.random.normal(keys[1], (B4, L4, M4), dtype=jnp.float32)
    w4 = jax.random.normal(keys[2], (L4, D), dtype=jnp.float32) / jnp.sqrt(L4)
    out4 = jax.block_until_ready(
        data_embedding_inverted(x4, xm4, w4, bias, compute_dtype=jnp.float32))
    assert out4.shape == (B4, N4 + M4, D)
    check(out4, ref_embed(x4, xm4, w4, bias), 1e-3, 1e-3)

    out4n = jax.block_until_ready(
        data_embedding_inverted(x4, None, w4, bias, compute_dtype=jnp.float32))
    check(out4n, ref_embed(x4, None, w4, bias), 1e-3, 1e-3)

    print("KERNEL_OK")
</pallas_src>

<mosaic_0001>
module attributes {stable_mosaic.version = 11 : i64} {
  func.func @_kernel_fused(%arg0: i32, %arg1: i32, %arg2: memref<1x8x4xf32, #tpu.memory_space<vmem>>, %arg3: memref<1x8x3xf32, #tpu.memory_space<vmem>>, %arg4: memref<8x128xf32, #tpu.memory_space<vmem>>, %arg5: memref<1x128xf32, #tpu.memory_space<vmem>>, %arg6: memref<1x7x128xf32, #tpu.memory_space<vmem>>) attributes {dimension_semantics = [#tpu.dimension_semantics<parallel>, #tpu.dimension_semantics<parallel>], iteration_bounds = array<i64: 2, 1>, scalar_prefetch = 0 : i64, scratch_operands = 0 : i64, tpu.core_type = #tpu.core_type<tc>, window_params = [{transform_indices = @transform_0, window_bounds = array<i64: 1, 8, 4>}, {transform_indices = @transform_1, window_bounds = array<i64: 1, 8, 3>}, {transform_indices = @transform_2, window_bounds = array<i64: 8, 128>}, {transform_indices = @transform_3, window_bounds = array<i64: 1, 128>}, {transform_indices = @transform_4, window_bounds = array<i64: 1, 7, 128>}]} {
    %c0 = arith.constant 0 : index
    %c0_0 = arith.constant 0 : index
    %0 = vector.load %arg4[%c0, %c0_0] : memref<8x128xf32, #tpu.memory_space<vmem>>, vector<8x128xf32>
    %c0_1 = arith.constant 0 : index
    %c0_2 = arith.constant 0 : index
    %1 = vector.load %arg5[%c0_1, %c0_2] : memref<1x128xf32, #tpu.memory_space<vmem>>, vector<1x128xf32>
    %c0_3 = arith.constant 0 : index
    %c0_4 = arith.constant 0 : index
    %c0_5 = arith.constant 0 : index
    %2 = vector.load %arg2[%c0_3, %c0_4, %c0_5] : memref<1x8x4xf32, #tpu.memory_space<vmem>>, vector<1x8x4xf32>
    %3 = vector.shape_cast %2 : vector<1x8x4xf32> to vector<8x4xf32>
    %cst = arith.constant dense<0.000000e+00> : vector<4x128xf32>
    %4 = tpu.matmul %3, %0, %cst {dimension_numbers = #tpu.dot_dimension_numbers<[0], [0], [1], [1], [0, 1, 1, 1], [], []>} : vector<8x4xf32>, vector<8x128xf32>, vector<4x128xf32> -> vector<4x128xf32>
    %5 = vector.broadcast %1 : vector<1x128xf32> to vector<4x128xf32>
    %6 = arith.addf %4, %5 : vector<4x128xf32>
    %c0_6 = arith.constant 0 : index
    %c0_7 = arith.constant 0 : index
    %c0_8 = arith.constant 0 : index
    %7 = vector.load %arg6[%c0_6, %c0_7, %c0_8] : memref<1x7x128xf32, #tpu.memory_space<vmem>>, vector<1x4x128xf32>
    %8 = vector.shape_cast %7 : vector<1x4x128xf32> to vector<4x128xf32>
    %9 = vector.shape_cast %6 : vector<4x128xf32> to vector<1x4x128xf32>
    tpu.vector_store %arg6[%c0_6, %c0_7, %c0_8], %9 {strides = array<i32>} : memref<1x7x128xf32, #tpu.memory_space<vmem>>, vector<1x4x128xf32>,
    %c0_9 = arith.constant 0 : index
    %c0_10 = arith.constant 0 : index
    %c0_11 = arith.constant 0 : index
    %10 = vector.load %arg3[%c0_9, %c0_10, %c0_11] : memref<1x8x3xf32, #tpu.memory_space<vmem>>, vector<1x8x3xf32>
    %11 = vector.shape_cast %10 : vector<1x8x3xf32> to vector<8x3xf32>
    %cst_12 = arith.constant dense<0.000000e+00> : vector<3x128xf32>
    %12 = tpu.matmul %11, %0, %cst_12 {dimension_numbers = #tpu.dot_dimension_numbers<[0], [0], [1], [1], [0, 1, 1, 1], [], []>} : vector<8x3xf32>, vector<8x128xf32>, vector<3x128xf32> -> vector<3x128xf32>
    %13 = vector.broadcast %1 : vector<1x128xf32> to vector<3x128xf32>
    %14 = arith.addf %12, %13 : vector<3x128xf32>
    %c0_13 = arith.constant 0 : index
    %c4 = arith.constant 4 : index
    %c0_14 = arith.constant 0 : index
    %15 = vector.load %arg6[%c0_13, %c4, %c0_14] : memref<1x7x128xf32, #tpu.memory_space<vmem>>, vector<1x3x128xf32>
    %16 = vector.shape_cast %15 : vector<1x3x128xf32> to vector<3x128xf32>
    %17 = vector.shape_cast %14 : vector<3x128xf32> to vector<1x3x128xf32>
    tpu.vector_store %arg6[%c0_13, %c4, %c0_14], %17 {strides = array<i32>} : memref<1x7x128xf32, #tpu.memory_space<vmem>>, vector<1x3x128xf32>,
    return
  }
  func.func @transform_0(%arg0: i32, %arg1: i32) -> (i32, i32, i32) {
    %c0_i32 = arith.constant 0 : i32
    %c0_i32_0 = arith.constant 0 : i32
    %c0_i32_1 = arith.constant 0 : i32
    return %arg0, %c0_i32, %c0_i32_0 : i32, i32, i32
  }
  func.func @transform_1(%arg0: i32, %arg1: i32) -> (i32, i32, i32) {
    %c0_i32 = arith.constant 0 : i32
    %c0_i32_0 = arith.constant 0 : i32
    %c0_i32_1 = arith.constant 0 : i32
    return %arg0, %c0_i32, %c0_i32_0 : i32, i32, i32
  }
  func.func @transform_2(%arg0: i32, %arg1: i32) -> (i32, i32) {
    %c0_i32 = arith.constant 0 : i32
    %c0_i32_0 = arith.constant 0 : i32
    return %c0_i32, %arg1 : i32, i32
  }
  func.func @transform_3(%arg0: i32, %arg1: i32) -> (i32, i32) {
    %c0_i32 = arith.constant 0 : i32
    %c0_i32_0 = arith.constant 0 : i32
    return %c0_i32, %arg1 : i32, i32
  }
  func.func @transform_4(%arg0: i32, %arg1: i32) -> (i32, i32, i32) {
    %c0_i32 = arith.constant 0 : i32
    %c0_i32_0 = arith.constant 0 : i32
    return %arg0, %c0_i32, %arg1 : i32, i32, i32
  }
}

</mosaic_0001>

<bundles_post_ra>
// kernel: tpu_custom_call.1
= control target key start
LH: loop header
LB: loop body
LE: loop exit
PB: predicated region body
PF: predicated region fallthrough
CT: control target
= control target key end

     0   :  { %s701_s15 = smov 0   ;;  %s703_s16 = smov 0   ;;  %s743_s0 = inlined_call_operand.vmem [shape: f32[2,8,4], index: 0, kind: input, shape index: {}]   ;;  %s744_s1 = inlined_call_operand.vmem [shape: f32[2,8,3], index: 1, kind: input, shape index: {}]   ;;  %s745_s2 = inlined_call_operand.vmem [shape: f32[8,128], index: 2, kind: input, shape index: {}]   ;;  %s746_s3 = inlined_call_operand.vmem [shape: f32[1,128], index: 3, kind: input, shape index: {}]   ;;  %s747_s4 = inlined_call_operand.vmem [shape: f32[2,7,128], index: 4, kind: output, shape index: {}]  }
   0x1   :  { %s705_s17 = smov 0  }
   0x2 LB: > { %s26_s18 = sadd.s32 1, %s668_s16  ;;  %p601_p0 = scmp.ge.s32.totalorder %s672_s17, 1  ;;  %s672_s17 = sphi %s705_s17, %s14_s17   ;;  %s668_s16 = sphi %s703_s16, %s749_s16   ;;  %s664_s15 = sphi %s701_s15, %s748_s15  }
   0x3   : > { %p28_p1 = scmp.ge.s32.totalorder %s26_s18, 2  ;;  %p201_p2 = scmp.lt.s32.totalorder %s672_s17, 3 }
   0x5   : > { %s751_s18 = smov (%p28_p1, %s26_s18), 0  ;;  %p202_p3 = pnand %p601_p0, %p201_p2 }
   0x6   : > { %p239_p4 = scmp.lt.s32.totalorder (!%p202_p3), %s664_s15, 1 }
   0x7   : > { %205 = sbr.rel (%p202_p3) target bundleno = 341 (0x155), region = 36 }
   0xc   : > { %v261_v0 = vld [vmem:[%s745_s2] sm:$0xff]  ;;  %v674_v1 = vmov 0.0   ;;  %vm675_vm0 = vmmov 0   ;;  %s753_s15 = smov (!%p239_p4, %s664_s15), 1  ;;  %vm302_vm1 = vcmask 64512  }
   0xd   : > { %614 = vmatprep.subr.mxu0 %v674_v1  ;;  %616 = vmatprep.mubr.msk.f32.mxu0 %vm675_vm0, %v674_v1  ;;  %s602_s21 = sshll.u32 %s753_s15, 3  ;;  %v605_v6 = vld [vmem:[%s746_s3] ss:$0 sm:$0xff] }
   0xe   : > { %615 = vmatpush3.msra.mxu0 %v261_v0  ;;  %619 = vmatprep.subr.mxu1 %v674_v1  ;;  %s242_s24 = scalar_lea.vmem %s743_s0, %s602_s21  ;;  %s246_s27 = scalar_lea.vmem %s744_s1, %s602_s21 }
   0xf   : > { %620 = vmatpush3.msra.mxu1 %v261_v0  ;;  %621 = vmatprep.mubr.msk.f32.mxu1 %vm675_vm0, %v674_v1  ;;  %v263_v2 = vld [vmem:[%s242_s24] sm:$0xff]  ;;  %s260_s6 = scalar_lea.vmem %s747_s4, %s602_s21 }
  0x10   : > { %270 = vxpose.xlu0.b32.start.end [1/1] (short) (narrow) %v263_v2, 8  ;;  %v377_v3 = vld [vmem:[%s246_s27] sm:$0xff] }
  0x14   : > { %378 = vxpose.xlu0.b32.start.end [1/1] (short) (narrow) %v377_v3, 8 }
  0x8c   : > { %v286_v4 = vpop.trf.xlu0 }
  0x8d   : > { %617 = vmatmul.mubr.msk.f32.vlgmr.msra.gmra.mxu0 %vm302_vm1, %v286_v4 }
  0x90   : > { %v394_v5 = vpop.trf.xlu0 }
  0x91   : > { %622 = vmatmul.mubr.msk.f32.vlgmr.msra.gmra.mxu1 %vm302_vm1, %v394_v5 }
 0x14d   : > { %v372_v7 = vpop.f32.mrf.mxu0 }
 0x14e   : > { %v373_v8 = vadd.f32 %v605_v6, %v372_v7 }
 0x14f   : > { %v618_v9 = vpop.f32.mrf.mxu0 }
 0x150   : > { %376 = vst [vmem:[%s260_s6] sm:$0xf] %v373_v8 }
 0x151   : > { %v479_v10 = vpop.f32.mrf.mxu1 }
 0x152   : > { %v480_v11 = vadd.f32 %v605_v6, %v479_v10 }
 0x153   : > { %v623_v12 = vpop.f32.mrf.mxu1 }
 0x154   : > { %483 = vst [vmem:[%s260_s6 + $0x4] sm:$0x7] %v480_v11 }
 0x155 PF: > { %s14_s17 = sadd.s32 1, %s672_s17   ;;  %s748_s15 = smov %s668_s16 }
 0x156   : > { %p11_p5 = scmp.ge.s32.totalorder %s14_s17, 4   ;;  %s749_s16 = smov %s751_s18 }
 0x158   :  { %13 = sbr.rel (!%p11_p5) target bundleno = 2 (0x2), region = 75 }

</bundles_post_ra>
